<compile_context>
chip_gen: v7x
topology: tpu7x:2x2x1
jax: 0.10.0
libtpu: 0.0.40
codegen_flags: <defaults>
</compile_context>

<pallas_src>
import functools

import jax
import jax.numpy as jnp
from jax.experimental import pallas as pl
from jax.experimental.pallas import tpu as pltpu


def _round_up(x, m):
    return (x + m - 1) // m * m


# ----------------------------------------------------------------------------
# Generation-aware tiling config
# ----------------------------------------------------------------------------
@functools.lru_cache(maxsize=None)
def _hw_config():
    """Tile sizes + scoped-VMEM limit chosen per TPU generation."""
    vmem = None
    try:
        vmem = int(pltpu.get_tpu_info().vmem_capacity_bytes)
    except Exception:
        vmem = None
    kind = ""
    try:
        kind = jax.devices()[0].device_kind.lower()
    except Exception:
        pass

    big_vmem = vmem is not None and vmem >= 100 * 1024 * 1024 and "v7" not in kind
    if not big_vmem:
        # v7x (64 MiB VMEM / TC) or unknown: conservative tiles + limit (safe everywhere).
        return dict(tm=256, tn=256, tk=512, vmem_limit=48 * 1024 * 1024)
    if "v5" in kind:
        # v5e: 4x128x128 MXU -> 128/256-aligned tiles; 128 MiB VMEM available.
        return dict(tm=256, tn=256, tk=512, vmem_limit=96 * 1024 * 1024)
    # v6e: 128 MiB VMEM -> larger tiles amortize per-grid-step overhead.
    return dict(tm=512, tn=512, tk=512, vmem_limit=96 * 1024 * 1024)


# ----------------------------------------------------------------------------
# Fused conv matmul kernel: bf16 operands, f32 accumulator,
# fused (optional) mask multiply + (optional) leaky/ReLU epilogue.
# ----------------------------------------------------------------------------
def _conv_matmul_kernel(*refs, slope, apply_mask):
    if apply_mask:
        a_ref, b_ref, m_ref, o_ref, acc_ref = refs
    else:
        a_ref, b_ref, o_ref, acc_ref = refs

    @pl.when(pl.program_id(2) == 0)
    def _init():
        acc_ref[...] = jnp.zeros_like(acc_ref)

    acc_ref[...] += jnp.dot(a_ref[...], b_ref[...],
                            preferred_element_type=jnp.float32)

    @pl.when(pl.program_id(2) == pl.num_programs(2) - 1)
    def _done():
        v = acc_ref[...]
        if apply_mask:
            v = v * m_ref[...]            # per-row mask (tm, 1) broadcast over tn
        if slope is not None:             # 0.0 -> ReLU, 0.2 -> LeakyReLU(0.2)
            v = jnp.where(v > 0, v, jnp.float32(slope) * v)
        o_ref[...] = v


def _fused_matmul(a, w_pad, Kdim, Cout, plan, mask_rows=None, slope=None):
    """a: (M, Kdim) bf16; w_pad: (Kp, Np) bf16 (pre-padded at init);
    mask_rows: (M, 1) f32 or None. Returns act((a @ w) * mask)[:, :Cout] in f32."""
    M = a.shape[0]
    Kp, Np = w_pad.shape
    tk, tn = plan['tk'], plan['tn']
    tm = min(plan['tm'], _round_up(max(M, 1), 128))
    Mp = _round_up(M, tm)

    a_p = jnp.pad(a, ((0, Mp - M), (0, Kp - Kdim)))
    inputs = [a_p, w_pad]
    in_specs = [
        pl.BlockSpec((tm, tk), lambda i, j, k: (i, k)),
        pl.BlockSpec((tk, tn), lambda i, j, k: (k, j)),
    ]
    apply_mask = mask_rows is not None
    if apply_mask:
        m_p = jnp.pad(mask_rows.astype(jnp.float32), ((0, Mp - M), (0, 0)))
        inputs.append(m_p)
        in_specs.append(pl.BlockSpec((tm, 1), lambda i, j, k: (i, 0)))

    grid = (Mp // tm, Np // tn, Kp // tk)
    cost = pl.CostEstimate(
        flops=2 * Mp * Np * Kp,
        transcendentals=0,
        bytes_accessed=(Mp * Kp * 2 + Kp * Np * 2 + Mp * Np * 4
                        + (Mp * 4 if apply_mask else 0)),
    )

    out = pl.pallas_call(
        functools.partial(_conv_matmul_kernel, slope=slope, apply_mask=apply_mask),
        out_shape=jax.ShapeDtypeStruct((Mp, Np), jnp.float32),
        grid_spec=pltpu.PrefetchScalarGridSpec(
            num_scalar_prefetch=0,
            grid=grid,
            in_specs=in_specs,
            out_specs=pl.BlockSpec((tm, tn), lambda i, j, k: (i, j)),
            scratch_shapes=[pltpu.VMEM((tm, tn), jnp.float32)],
        ),
        compiler_params=pltpu.CompilerParams(
            dimension_semantics=("parallel", "parallel", "arbitrary"),
            vmem_limit_bytes=plan['vmem_limit'],
        ),
        cost_estimate=cost,
    )(*inputs)
    return out[:M, :Cout]


# ----------------------------------------------------------------------------
# Conv / pool glue
# ----------------------------------------------------------------------------
def _im2col(x, K, S, P):
    """x: (N,H,W,C) -> patches (N,Ho,Wo,K*K*C) ordered (kh, kw, c)."""
    N, H, W, C = x.shape
    Ho = (H + 2 * P - K) // S + 1
    Wo = (W + 2 * P - K) // S + 1
    xp = jnp.pad(x, ((0, 0), (P, P), (P, P), (0, 0)))
    cols = []
    for kh in range(K):
        for kw in range(K):
            sl = xp[:, kh:kh + S * (Ho - 1) + 1:S, kw:kw + S * (Wo - 1) + 1:S, :]
            cols.append(sl)
    return jnp.concatenate(cols, axis=-1), Ho, Wo


def conv2d_fused(p, x, mask=None, slope=None):
    """Conv (no bias, matching conv_bias=False) + optional output-mask multiply +
    optional activation, all inside one Pallas matmul call.
    x: (N,H,W,Cin) f32; mask: (N,Ho,Wo,1) f32 or None."""
    K, S, P = p['K'], p['S'], p['P']
    N = x.shape[0]
    # TODO(synk): im2col still materializes a K*K-times-larger patch tensor in HBM
    # (now in bf16 to halve that traffic); for large images fuse the patch
    # extraction into the matmul kernel's index_map instead.
    patches, Ho, Wo = _im2col(x.astype(jnp.bfloat16), K, S, P)
    M = N * Ho * Wo
    a = patches.reshape(M, p['Kdim'])
    m_rows = None if mask is None else mask.reshape(M, 1)
    out = _fused_matmul(a, p['w_mat'], p['Kdim'], p['out_ch'], p['plan'],
                        mask_rows=m_rows, slope=slope)
    return out.reshape(N, Ho, Wo, p['out_ch'])


def maxpool2d(m, K, S, P):
    """MaxPool2d equivalent on the single-channel mask (NHWC). Tiny data ->
    not worth a dedicated Pallas kernel (per performance review)."""
    return jax.lax.reduce_window(
        m, -jnp.inf, jax.lax.max,
        window_dimensions=(1, K, K, 1),
        window_strides=(1, S, S, 1),
        padding=((0, 0), (P, P), (P, P), (0, 0)))


def upsample2(x):
    """Nearest-neighbor 2x upsample on NHWC."""
    return jnp.repeat(jnp.repeat(x, 2, axis=1), 2, axis=2)


# ----------------------------------------------------------------------------
# DSModule / DSNet
# ----------------------------------------------------------------------------
def _ds_params(key, in_ch, out_ch, sample, defor, activ):
    if sample == 'down-7':
        K, S, P, cin = 7, 2, 3, in_ch + 1
    elif sample == 'down-5':
        K, S, P, cin = 5, 2, 2, in_ch + 1
    elif sample == 'down-3':
        K, S, P, cin = 3, 2, 1, in_ch + 1
    else:  # 'none-3'
        K, S, P, cin = 3, 1, 1, in_ch + 2
    Kdim = K * K * cin
    w = jax.random.normal(key, (K, K, cin, out_ch), jnp.float32) / jnp.sqrt(Kdim)

    cfg = _hw_config()
    tk = min(cfg['tk'], _round_up(Kdim, 128))
    Kp = _round_up(Kdim, tk)
    tn = min(cfg['tn'], _round_up(out_ch, 128))
    Np = _round_up(out_ch, tn)
    # Pre-reshape / cast(bf16) / pad the weight matrix once per layer.
    w_mat = jnp.pad(w.reshape(Kdim, out_ch).astype(jnp.bfloat16),
                    ((0, Kp - Kdim), (0, Np - out_ch)))
    slope = 0.0 if activ == 'relu' else (0.2 if activ == 'leaky' else None)
    plan = dict(tk=tk, tn=tn, tm=cfg['tm'], vmem_limit=cfg['vmem_limit'])
    return dict(w_mat=w_mat, K=K, S=S, P=P, Kdim=Kdim,
                has_offset=(defor and sample != 'none-3'),
                has_offset0=(defor and sample == 'none-3'),
                in_ch=in_ch, out_ch=out_ch, act_slope=slope, plan=plan)


def ds_module_forward(p, x, mask):
    """x: (N,H,W,Cin), mask: (N,H,W,Cm) -> (h, h_mask) in NHWC."""
    K, S, P = p['K'], p['S'], p['P']
    if p['has_offset']:
        m1 = mask[..., :1]
        xin = jnp.concatenate([x, m1], axis=-1)
        # TODO(synk): ConvOffset2D treated as identity; the blend
        # x*m + (1-m)*x is then exactly x, so it is skipped (no kernel launch).
        h_mask = maxpool2d(m1, K, S, P)
        # conv + h*h_mask + rn(identity) + ReLU fused into one Pallas call.
        h = conv2d_fused(p, xin, mask=h_mask, slope=p['act_slope'])
    elif p['has_offset0']:
        split = p['in_ch'] - p['out_ch']
        # TODO(synk): ConvOffset2D (offset1) treated as identity -> blend is a no-op.
        h0 = jnp.concatenate([x[..., :split], mask[..., :1]], axis=-1)
        h1 = jnp.concatenate([x[..., split:], mask[..., 1:]], axis=-1)
        # conv + rn(identity) + LeakyReLU fused (no mask multiply in this branch).
        h = conv2d_fused(p, jnp.concatenate([h0, h1], axis=-1),
                         mask=None, slope=p['act_slope'])
        h_mask = upsample2(mask[..., :1])
    else:
        h_mask = maxpool2d(mask[..., :1], K, S, P)
        # conv + h*h_mask (+ activation if any) fused into one Pallas call.
        h = conv2d_fused(p, jnp.concatenate([x, mask], axis=-1),
                         mask=h_mask, slope=p['act_slope'])
    return h, h_mask


def init_dsnet(key, layer_size=4, input_channels=3):
    keys = jax.random.split(key, 2 * layer_size + 2)
    ki = iter(keys)
    params = {}
    params['enc_1'] = _ds_params(next(ki), input_channels, 64, 'down-7', False, 'relu')
    params['enc_2'] = _ds_params(next(ki), 64, 128, 'down-5', True, 'relu')
    params['enc_3'] = _ds_params(next(ki), 128, 256, 'down-5', True, 'relu')
    params['enc_4'] = _ds_params(next(ki), 256, 512, 'down-3', True, 'relu')
    for i in range(4, layer_size):
        params[f'enc_{i + 1}'] = _ds_params(next(ki), 512, 512, 'down-3', True, 'relu')
        params[f'dec_{i + 1}'] = _ds_params(next(ki), 512 + 512, 512, 'none-3', True, 'leaky')
    params['dec_4'] = _ds_params(next(ki), 512 + 256, 256, 'none-3', True, 'leaky')
    params['dec_3'] = _ds_params(next(ki), 256 + 128, 128, 'none-3', True, 'leaky')
    params['dec_2'] = _ds_params(next(ki), 128 + 64, 64, 'none-3', True, 'leaky')
    params['dec_1'] = _ds_params(next(ki), 64 + input_channels, input_channels,
                                 'none-3', False, None)
    return params


def dsnet_forward(params, input_nchw, input_mask_nchw, layer_size=4):
    # NCHW -> NHWC
    x = jnp.transpose(input_nchw.astype(jnp.float32), (0, 2, 3, 1))
    mask = jnp.transpose(input_mask_nchw.astype(jnp.float32), (0, 2, 3, 1))[..., :1]

    h_dict = {'h_0': x}
    m_dict = {'h_0': mask}
    prev = 'h_0'
    for i in range(1, layer_size + 1):
        hk = f'h_{i}'
        h_dict[hk], m_dict[hk] = ds_module_forward(params[f'enc_{i}'],
                                                   h_dict[prev], m_dict[prev])
        prev = hk

    h = h_dict[f'h_{layer_size}']
    h_mask = m_dict[f'h_{layer_size}']
    h_mask = upsample2(h_mask)
    for i in range(layer_size, 0, -1):
        h = upsample2(h)
        h = jnp.concatenate([h, h_dict[f'h_{i - 1}']], axis=-1)
        h_mask = jnp.concatenate([h_mask, m_dict[f'h_{i - 1}']], axis=-1)
        h, h_mask = ds_module_forward(params[f'dec_{i}'], h, h_mask)
        if i == 3:
            # TODO(synk): PixelContextualAttention treated as identity (source not provided).
            h = h

    # NHWC -> NCHW
    return (jnp.transpose(h, (0, 3, 1, 2)),
            jnp.transpose(h_mask, (0, 3, 1, 2)))


if __name__ == "__main__":
    key = jax.random.PRNGKey(0)
    kp, kx, km = jax.random.split(key, 3)

    LAYER_SIZE = 4          # small, shape-consistent configuration
    N, C, H, W = 2, 3, 16, 16

    params = init_dsnet(kp, layer_size=LAYER_SIZE, input_channels=C)
    x = jax.random.normal(kx, (N, C, H, W), jnp.float32)
    mask = (jax.random.uniform(km, (N, C, H, W)) > 0.25).astype(jnp.float32)

    h, h_mask = dsnet_forward(params, x, mask, layer_size=LAYER_SIZE)
    jax.block_until_ready((h, h_mask))

    assert h.shape == (N, C, H, W), h.shape
    assert h_mask.shape == (N, 1, H, W), h_mask.shape
    print("KERNEL_OK")
</pallas_src>

<mosaic_0001>
module attributes {stable_mosaic.version = 11 : i64} {
  func.func @_conv_matmul_kernel(%arg0: i32, %arg1: i32, %arg2: i32, %arg3: memref<128x256xbf16, #tpu.memory_space<vmem>>, %arg4: memref<256x128xbf16, #tpu.memory_space<vmem>>, %arg5: memref<128x1xf32, #tpu.memory_space<vmem>>, %arg6: memref<128x128xf32, #tpu.memory_space<vmem>>, %arg7: memref<128x128xf32, #tpu.memory_space<vmem>>) attributes {dimension_semantics = [#tpu.dimension_semantics<parallel>, #tpu.dimension_semantics<parallel>, #tpu.dimension_semantics<arbitrary>], iteration_bounds = array<i64: 1, 1, 1>, scalar_prefetch = 0 : i64, scratch_operands = 1 : i64, tpu.core_type = #tpu.core_type<tc>, window_params = [{transform_indices = @transform_0, window_bounds = array<i64: 128, 256>}, {transform_indices = @transform_1, window_bounds = array<i64: 256, 128>}, {transform_indices = @transform_2, window_bounds = array<i64: 128, 1>}, {transform_indices = @transform_3, window_bounds = array<i64: 128, 128>}]} {
    %c0_i32 = arith.constant 0 : i32
    %0 = arith.cmpi eq, %arg2, %c0_i32 : i32
    %1 = arith.extui %0 : i1 to i32
    %c0_i32_0 = arith.constant 0 : i32
    %2 = arith.cmpi ne, %1, %c0_i32_0 : i32
    scf.if %2 {
      %cst_10 = arith.constant 0.000000e+00 : f32
      %12 = vector.broadcast %cst_10 : f32 to vector<128x128xf32>
      %c0_11 = arith.constant 0 : index
      %c0_12 = arith.constant 0 : index
      %13 = vector.load %arg7[%c0_11, %c0_12] : memref<128x128xf32, #tpu.memory_space<vmem>>, vector<128x128xf32>
      tpu.vector_store %arg7[%c0_11, %c0_12], %12 {strides = array<i32>} : memref<128x128xf32, #tpu.memory_space<vmem>>, vector<128x128xf32>,
    } else {
    }
    %c0 = arith.constant 0 : index
    %c0_1 = arith.constant 0 : index
    %3 = vector.load %arg7[%c0, %c0_1] : memref<128x128xf32, #tpu.memory_space<vmem>>, vector<128x128xf32>
    %c0_2 = arith.constant 0 : index
    %c0_3 = arith.constant 0 : index
    %4 = vector.load %arg3[%c0_2, %c0_3] : memref<128x256xbf16, #tpu.memory_space<vmem>>, vector<128x256xbf16>
    %c0_4 = arith.constant 0 : index
    %c0_5 = arith.constant 0 : index
    %5 = vector.load %arg4[%c0_4, %c0_5] : memref<256x128xbf16, #tpu.memory_space<vmem>>, vector<256x128xbf16>
    %cst = arith.constant dense<0.000000e+00> : vector<128x128xf32>
    %6 = tpu.matmul %4, %5, %cst {dimension_numbers = #tpu.dot_dimension_numbers<[1], [0], [0], [1], [0, 0, 1, 1], [], []>} : vector<128x256xbf16>, vector<256x128xbf16>, vector<128x128xf32> -> vector<128x128xf32>
    %7 = arith.addf %3, %6 : vector<128x128xf32>
    %c0_6 = arith.constant 0 : index
    %c0_7 = arith.constant 0 : index
    %8 = vector.load %arg7[%c0_6, %c0_7] : memref<128x128xf32, #tpu.memory_space<vmem>>, vector<128x128xf32>
    tpu.vector_store %arg7[%c0_6, %c0_7], %7 {strides = array<i32>} : memref<128x128xf32, #tpu.memory_space<vmem>>, vector<128x128xf32>,
    %c0_i32_8 = arith.constant 0 : i32
    %9 = arith.cmpi eq, %arg2, %c0_i32_8 : i32
    %10 = arith.extui %9 : i1 to i32
    %c0_i32_9 = arith.constant 0 : i32
    %11 = arith.cmpi ne, %10, %c0_i32_9 : i32
    scf.if %11 {
      %c0_10 = arith.constant 0 : index
      %c0_11 = arith.constant 0 : index
      %12 = vector.load %arg7[%c0_10, %c0_11] : memref<128x128xf32, #tpu.memory_space<vmem>>, vector<128x128xf32>
      %c0_12 = arith.constant 0 : index
      %c0_13 = arith.constant 0 : index
      %13 = vector.load %arg5[%c0_12, %c0_13] : memref<128x1xf32, #tpu.memory_space<vmem>>, vector<128x1xf32>
      %14 = vector.broadcast %13 : vector<128x1xf32> to vector<128x128xf32>
      %15 = arith.mulf %12, %14 : vector<128x128xf32>
      %cst_14 = arith.constant 0.000000e+00 : f32
      %16 = vector.broadcast %cst_14 : f32 to vector<128x128xf32>
      %17 = arith.cmpf ogt, %15, %16 : vector<128x128xf32>
      %cst_15 = arith.constant 0.000000e+00 : f32
      %18 = vector.broadcast %cst_15 : f32 to vector<128x128xf32>
      %19 = arith.mulf %18, %15 : vector<128x128xf32>
      %20 = arith.select %17, %15, %19 : vector<128x128xi1>, vector<128x128xf32>
      %c0_16 = arith.constant 0 : index
      %c0_17 = arith.constant 0 : index
      %21 = vector.load %arg6[%c0_16, %c0_17] : memref<128x128xf32, #tpu.memory_space<vmem>>, vector<128x128xf32>
      tpu.vector_store %arg6[%c0_16, %c0_17], %20 {strides = array<i32>} : memref<128x128xf32, #tpu.memory_space<vmem>>, vector<128x128xf32>,
    } else {
    }
    return
  }
  func.func @transform_0(%arg0: i32, %arg1: i32, %arg2: i32) -> (i32, i32) {
    %c0_i32 = arith.constant 0 : i32
    return %arg0, %arg2 : i32, i32
  }
  func.func @transform_1(%arg0: i32, %arg1: i32, %arg2: i32) -> (i32, i32) {
    %c0_i32 = arith.constant 0 : i32
    return %arg2, %arg1 : i32, i32
  }
  func.func @transform_2(%arg0: i32, %arg1: i32, %arg2: i32) -> (i32, i32) {
    %c0_i32 = arith.constant 0 : i32
    %c0_i32_0 = arith.constant 0 : i32
    return %arg0, %c0_i32 : i32, i32
  }
  func.func @transform_3(%arg0: i32, %arg1: i32, %arg2: i32) -> (i32, i32) {
    %c0_i32 = arith.constant 0 : i32
    return %arg0, %arg1 : i32, i32
  }
}

</mosaic_0001>

<bundles_post_ra>
// kernel: tpu_custom_call.1
= control target key start
LH: loop header
LB: loop body
LE: loop exit
PB: predicated region body
PF: predicated region fallthrough
CT: control target
= control target key end

     0   :  { %8 = vsyncpa [#allocation4], 0  ;;  %s999_s0 = inlined_call_operand.vmem [shape: bf16[128,256], index: 0, kind: input, shape index: {}]   ;;  %s1000_s1 = inlined_call_operand.hbm [shape: bf16[256,128], index: 1, kind: input, shape index: {}]   ;;  %s1001_s2 = inlined_call_operand.vmem [shape: f32[128,1], index: 2, kind: input, shape index: {}]   ;;  %s1002_s3 = inlined_call_operand.hbm [shape: f32[128,128], index: 3, kind: output, shape index: {}]  }
   0x1   :  { %9 = vsyncpa [#allocation5], 0  ;;  %s840_s12 = smov [#allocation3]   ;;  %s792_s16 = scalar_lea.hbm %s1000_s1, 2048 }
   0x2   :  { %s17_s13 = sshll.u32 %s840_s12, 4  ;;  %p793_p0 = scmp.ne.s32.totalorder %s1000_s1, %s792_s16  ;;  %s18_s13 = int_to_ptr.vmem [resolvable:$true] %s17_s13 }
   0x3   :  { %p796_p1 = scmp.lt.u32.totalorder %s792_s16, %s1000_s1 }
   0x5   :  { %p798_p2 = pnand %p796_p1, %p793_p0 }
   0x7   :  { %801 = shalt.err (!%p798_p2)
}
   0x8   :  { %s802_s21 = scalar_lea.vmem %s18_s13, 2048  ;;  %p807_p4 = scmp.lt.s32.totalorder %s18_s13, %s18_s13 }
   0x9   :  { %p803_p3 = scmp.ne.s32.totalorder %s18_s13, %s802_s21  ;;  %p808_p5 = scmp.lt.s32.totalorder %s802_s21, %s802_s21 }
   0xb   :  { %p809_p6 = por %p808_p5, %p807_p4 }
   0xd   :  { %p810_p7 = pnand %p809_p6, %p803_p3 }
   0xf   :  { %813 = shalt.err (!%p810_p7)
}
  0x10   :  { %s841_s22 = smov 64   ;;  %s842_s23 = smov 4  }
  0x11   :  { %23 = dma.hbm_to_vmem [thread:$0]  %s1000_s1, 2048, %s18_s13, [#allocation4], %s841_s22, %s841_s22, %s842_s23  }
  0x12   :  { %836 = dma.done.wait [#allocation4], 2048  }
  0x13   :  { %837 = vsyncadd [#allocation4], 4294965248  ;;  %v843_v0 = vmov 0   ;;  %v752_v1 = vld [vmem:[#allocation3 + $0x40] sm:$0xff]   ;;  %v754_v3 = vld [vmem:[#allocation3 + $0x48] sm:$0xff]  }
  0x14   :  { %751 = vset.pattern.permute.xlu1 %v843_v0  ;;  %750 = vset.pattern.permute.xlu0 %v843_v0  ;;  %v753_v2 = vld [vmem:[#allocation3] sm:$0xff]   ;;  %v755_v4 = vld [vmem:[#allocation3 + $0x8] sm:$0xff]   ;;  %v756_v5 = vld [vmem:[#allocation3 + $0x50] sm:$0xff]  }
  0x15   :  { %663 = vmatprep.subr.bf16.mxu0 %v752_v1  ;;  %727 = vmatprep.subr.bf16.mxu1 %v752_v1  ;;  %v757_v6 = vld [vmem:[#allocation3 + $0x10] sm:$0xff]   ;;  %v758_v7 = vld [vmem:[#allocation3 + $0x58] sm:$0xff]   ;;  %v760_v9 = vld [vmem:[#allocation3 + $0x60] sm:$0xff]  }
  0x16   :  { %664 = vmatpush3.bf16.msra.mxu0 %v753_v2  ;;  %735 = vmatpush3.bf16.msra.mxu1 %v753_v2  ;;  %v759_v8 = vld [vmem:[#allocation3 + $0x18] sm:$0xff]   ;;  %v761_v10 = vld [vmem:[#allocation3 + $0x20] sm:$0xff]   ;;  %v762_v11 = vld [vmem:[#allocation3 + $0x68] sm:$0xff]  }
  0x17   :  { %665 = vmatprep.subr.bf16.mxu0 %v754_v3  ;;  %728 = vmatprep.subr.bf16.mxu1 %v754_v3  ;;  %v770_v12 = vld [vmem:[%s999_s0 + $0x4] ss:$8 sps:$4 sm:$0xff]   ;;  %v764_v15 = vld [vmem:[#allocation3 + $0x70] sm:$0xff]   ;;  %v766_v17 = vld [vmem:[#allocation3 + $0x78] sm:$0xff]  }
  0x18   :  { %v773_v13 = vld [vmem:[%s999_s0 + $0x44] ss:$8 sps:$4 sm:$0xff]   ;;  %322 = vmatprep.mubr.bf16.mxu0 %v770_v12  ;;  %v765_v16 = vld [vmem:[#allocation3 + $0x30] sm:$0xff]   ;;  %v767_v19 = vld [vmem:[#allocation3 + $0x38] sm:$0xff]  }
  0x19   :  { %v763_v14 = vld [vmem:[#allocation3 + $0x28] sm:$0xff]   ;;  %354 = vmatprep.mubr.bf16.mxu1 %v773_v13  ;;  %v440_v18 = vld [vmem:[%s1001_s2 + $0x10] sm:$0xff]  ;;  %v438_v20 = vld [vmem:[%s1001_s2] sm:$0xff] }
  0x1a   :  { %666 = vmatpush3.bf16.msra.mxu0 %v755_v4  ;;  %736 = vmatpush3.bf16.msra.mxu1 %v755_v4  ;;  %v768_v21 = vld [vmem:[%s999_s0] ss:$8 sps:$4 sm:$0xff]   ;;  %v441_v23 = vld [vmem:[%s1001_s2 + $0x18] sm:$0xff]  ;;  %v444_v32 = vld [vmem:[%s1001_s2 + $0x30] sm:$0xff] }
  0x1b   :  { %667 = vmatprep.subr.bf16.mxu0 %v756_v5  ;;  %729 = vmatprep.subr.bf16.mxu1 %v756_v5  ;;  %v771_v22 = vld [vmem:[%s999_s0 + $0x40] ss:$8 sps:$4 sm:$0xff]   ;;  %v774_v25 = vld [vmem:[%s999_s0 + $0x14] ss:$8 sps:$4 sm:$0xff]   ;;  %v778_v29 = vld [vmem:[%s999_s0 + $0x10] ss:$8 sps:$4 sm:$0xff]  }
  0x1c   :  { %466 = vperm.xlu1 %751, %v440_v18   ;;  %456 = vperm.xlu0 %750, %v438_v20   ;;  %v439_v24 = vld [vmem:[%s1001_s2 + $0x8] sm:$0xff]  ;;  %v776_v26 = vld [vmem:[%s999_s0 + $0x54] ss:$8 sps:$4 sm:$0xff]   ;;  %v442_v28 = vld [vmem:[%s1001_s2 + $0x20] sm:$0xff] }
  0x1d   :  { %v443_v27 = vld [vmem:[%s1001_s2 + $0x28] sm:$0xff]  ;;  %v779_v30 = vld [vmem:[%s999_s0 + $0x50] ss:$8 sps:$4 sm:$0xff]   ;;  %v446_v36 = vld [vmem:[%s1001_s2 + $0x40] sm:$0xff] }
  0x1e   :  { %668 = vmatpush3.bf16.msra.mxu0 %v757_v6  ;;  %737 = vmatpush3.bf16.msra.mxu1 %v757_v6  ;;  %v445_v31 = vld [vmem:[%s1001_s2 + $0x38] sm:$0xff]  ;;  %v780_v33 = vld [vmem:[%s999_s0 + $0x24] ss:$8 sps:$4 sm:$0xff]   ;;  %v784_v37 = vld [vmem:[%s999_s0 + $0x20] ss:$8 sps:$4 sm:$0xff]  }
  0x1f   :  { %669 = vmatprep.subr.bf16.mxu0 %v758_v7  ;;  %730 = vmatprep.subr.bf16.mxu1 %v758_v7  ;;  %v782_v34 = vld [vmem:[%s999_s0 + $0x64] ss:$8 sps:$4 sm:$0xff]   ;;  %v785_v38 = vld [vmem:[%s999_s0 + $0x60] ss:$8 sps:$4 sm:$0xff]   ;;  %v449_v39 = vld [vmem:[%s1001_s2 + $0x58] sm:$0xff] }
  0x20   :  { %471 = vperm.xlu1 %751, %v441_v23   ;;  %461 = vperm.xlu0 %750, %v439_v24   ;;  %v447_v35 = vld [vmem:[%s1001_s2 + $0x48] sm:$0xff]  ;;  %v448_v40 = vld [vmem:[%s1001_s2 + $0x50] sm:$0xff]  ;;  %v450_v44 = vld [vmem:[%s1001_s2 + $0x60] sm:$0xff] }
  0x21   :  { %v786_v41 = vld [vmem:[%s999_s0 + $0x34] ss:$8 sps:$4 sm:$0xff]   ;;  %v451_v43 = vld [vmem:[%s1001_s2 + $0x68] sm:$0xff]  ;;  %v790_v45 = vld [vmem:[%s999_s0 + $0x30] ss:$8 sps:$4 sm:$0xff]  }
  0x22   :  { %670 = vmatpush3.bf16.msra.mxu0 %v759_v8  ;;  %738 = vmatpush3.bf16.msra.mxu1 %v759_v8  ;;  %v788_v42 = vld [vmem:[%s999_s0 + $0x74] ss:$8 sps:$4 sm:$0xff]   ;;  %v791_v46 = vld [vmem:[%s999_s0 + $0x70] ss:$8 sps:$4 sm:$0xff]   ;;  %s844_s0 = smov [#allocation6]  }
  0x23   :  { %671 = vmatprep.subr.bf16.mxu0 %v760_v9  ;;  %731 = vmatprep.subr.bf16.mxu1 %v760_v9  ;;  %v453_v47 = vld [vmem:[%s1001_s2 + $0x78] sm:$0xff]  ;;  %v452_v48 = vld [vmem:[%s1001_s2 + $0x70] sm:$0xff]  ;;  %s619_s2 = sshll.u32 %s844_s0, 4  ;;  %s620_s2 = int_to_ptr.vmem [resolvable:$true] %s619_s2 }
  0x24   :  { %481 = vperm.xlu1 %751, %v443_v27   ;;  %476 = vperm.xlu0 %750, %v442_v28   ;;  %s814_s6 = scalar_lea.vmem %s620_s2, 2048  ;;  %p819_p9 = scmp.lt.s32.totalorder %s620_s2, %s620_s2 }
  0x25   :  { %p815_p8 = scmp.ne.s32.totalorder %s620_s2, %s814_s6  ;;  %p820_p10 = scmp.lt.s32.totalorder %s814_s6, %s814_s6 }
  0x26   :  { %672 = vmatpush3.bf16.msra.mxu0 %v761_v10  ;;  %739 = vmatpush3.bf16.msra.mxu1 %v761_v10 }
  0x27   :  { %673 = vmatprep.subr.bf16.mxu0 %v762_v11  ;;  %732 = vmatprep.subr.bf16.mxu1 %v762_v11  ;;  %p821_p11 = por %p820_p10, %p819_p9 }
  0x28   :  { %491 = vperm.xlu1 %751, %v445_v31   ;;  %486 = vperm.xlu0 %750, %v444_v32  }
  0x29   :  { %p822_p12 = pnand %p821_p11, %p815_p8 }
  0x2a   :  { %674 = vmatpush3.bf16.msra.mxu0 %v763_v14  ;;  %740 = vmatpush3.bf16.msra.mxu1 %v763_v14 }
  0x2b   :  { %675 = vmatprep.subr.bf16.mxu0 %v764_v15  ;;  %733 = vmatprep.subr.bf16.mxu1 %v764_v15 }
  0x2c   :  { %501 = vperm.xlu1 %751, %v447_v35   ;;  %496 = vperm.xlu0 %750, %v446_v36  }
  0x2e   :  { %676 = vmatpush3.bf16.msra.mxu0 %v765_v16  ;;  %741 = vmatpush3.bf16.msra.mxu1 %v765_v16 }
  0x2f   :  { %677 = vmatprep.subr.bf16.mxu0 %v766_v17  ;;  %734 = vmatprep.subr.bf16.mxu1 %v766_v17 }
  0x30   :  { %511 = vperm.xlu1 %751, %v449_v39   ;;  %506 = vperm.xlu0 %750, %v448_v40  }
  0x32   :  { %678 = vmatpush3.bf16.msra.mxu0 %v767_v19  ;;  %742 = vmatpush3.bf16.msra.mxu1 %v767_v19 }
  0x34   :  { %521 = vperm.xlu1 %751, %v451_v43   ;;  %516 = vperm.xlu0 %750, %v450_v44  }
  0x35   :  { %323 = vmatmul.mubr.bf16.vlgmr.msra.gmra.mrb[0].mxu0 %v768_v21  ;;  %355 = vmatmul.mubr.bf16.vlgmr.msra.gmra.mrb[0].mxu1 %v771_v22 }
  0x36   :  { %330 = vmatprep.mubr.bf16.mxu0 %v774_v25  ;;  %362 = vmatprep.mubr.bf16.mxu1 %v776_v26 }
  0x38   :  { %531 = vperm.xlu1 %751, %v453_v47   ;;  %526 = vperm.xlu0 %750, %v452_v48  }
  0x3d   :  { %331 = vmatmul.mubr.bf16.gmra.mrb[4].mxu0 %v778_v29  ;;  %363 = vmatmul.mubr.bf16.gmra.mrb[4].mxu1 %v779_v30 }
  0x3e   :  { %338 = vmatprep.mubr.bf16.mxu0 %v780_v33  ;;  %370 = vmatprep.mubr.bf16.mxu1 %v782_v34 }
  0x45   :  { %339 = vmatmul.mubr.bf16.gmra.mrb[8].mxu0 %v784_v37  ;;  %371 = vmatmul.mubr.bf16.gmra.mrb[8].mxu1 %v785_v38 }
  0x46   :  { %346 = vmatprep.mubr.bf16.mxu0 %v786_v41  ;;  %378 = vmatprep.mubr.bf16.mxu1 %v788_v42 }
  0x4d   :  { %347 = vmatmul.mubr.bf16.gmra.mrb[12].mxu0 %v790_v45  ;;  %379 = vmatmul.mubr.bf16.gmra.mrb[12].mxu1 %v791_v46 }
  0x9b   :  { %v457_v49 = vpop.permute.xlu0 %456  ;;  %v467_v50 = vpop.permute.xlu1 %466 }
  0x9f   :  { %v462_v51 = vpop.permute.xlu0 %461  ;;  %v472_v52 = vpop.permute.xlu1 %471 }
  0xa3   :  { %v975_v53 = vpop.permute.xlu0 %476  ;;  %v977_v54 = vpop.permute.xlu1 %481 }
  0xa7   :  { %v979_v55 = vpop.permute.xlu0 %486  ;;  %v981_v56 = vpop.permute.xlu1 %491 }
  0xab   :  { %v497_v57 = vpop.permute.xlu0 %496  ;;  %v502_v8 = vpop.permute.xlu1 %501 }
  0xaf   :  { %v507_v11 = vpop.permute.xlu0 %506  ;;  %v512_v34 = vpop.permute.xlu1 %511 }
  0xb3   :  { %v517_v37 = vpop.permute.xlu0 %516 }
 0x108   :  { %v679_v58 = vpop.f32.mrb[0].mxu0  ;;  %v703_v59 = vpop.f32.mrb[0].mxu1 }
 0x109   :  { %v680_v60 = vpop.f32.mrb[1].mxu0  ;;  %v704_v61 = vpop.f32.mrb[1].mxu1 }
 0x10a   :  { %v681_v62 = vadd.f32 %v680_v60, %v679_v58  ;;  %v705_v63 = vadd.f32 %v704_v61, %v703_v59  ;;  %v682_v0 = vpop.f32.mrb[2].mxu0  ;;  %v706_v1 = vpop.f32.mrb[2].mxu1 }
 0x10b   :  { %v683_v2 = vpop.f32.mrb[3].mxu0  ;;  %v707_v3 = vpop.f32.mrb[3].mxu1 }
 0x10c   :  { %v534_v4 = vmul.f32 %v681_v62, %v457_v49  ;;  %v542_v5 = vmul.f32 %v705_v63, %v497_v57  ;;  %v684_v6 = vadd.f32 %v683_v2, %v682_v0  ;;  %v708_v7 = vadd.f32 %v707_v3, %v706_v1  ;;  %v522_v0 = vpop.permute.xlu1 %521  ;;  %v527_v3 = vpop.permute.xlu0 %526 }
 0x10e   :  { %vm550_vm0 = vcmp.gt.f32.partialorder %v534_v4, 0.0  ;;  %v566_v9 = vmul.f32 0.0, %v534_v4  ;;  %vm558_vm1 = vcmp.gt.f32.partialorder %v542_v5, 0.0  ;;  %v574_v10 = vmul.f32 0.0, %v542_v5 }
 0x10f   :  { %v535_v12 = vmul.f32 %v684_v6, %v462_v51  ;;  %v543_v13 = vmul.f32 %v708_v7, %v502_v8 }
 0x110   :  { %v582_v14 = vsel %vm550_vm0, %v534_v4, %v566_v9  ;;  %v590_v15 = vsel %vm558_vm1, %v542_v5, %v574_v10  ;;  %v685_v16 = vpop.f32.mrb[4].mxu0  ;;  %v709_v17 = vpop.f32.mrb[4].mxu1 }
 0x111   :  { %598 = vst [vmem:[#allocation6] sm:$0xff] %v582_v14  ;;  %606 = vst [vmem:[#allocation6 + $0x40] sm:$0xff] %v590_v15  ;;  %vm551_vm2 = vcmp.gt.f32.partialorder %v535_v12, 0.0  ;;  %v567_v18 = vmul.f32 0.0, %v535_v12  ;;  %vm559_vm3 = vcmp.gt.f32.partialorder %v543_v13, 0.0  ;;  %v575_v19 = vmul.f32 0.0, %v543_v13 }
 0x112   :  { %v686_v20 = vpop.f32.mrb[5].mxu0  ;;  %v710_v21 = vpop.f32.mrb[5].mxu1 }
 0x113   :  { %v687_v22 = vadd.f32 %v686_v20, %v685_v16  ;;  %v711_v23 = vadd.f32 %v710_v21, %v709_v17  ;;  %v688_v24 = vpop.f32.mrb[6].mxu0  ;;  %v712_v25 = vpop.f32.mrb[6].mxu1  ;;  %v583_v26 = vsel %vm551_vm2, %v535_v12, %v567_v18  ;;  %v591_v27 = vsel %vm559_vm3, %v543_v13, %v575_v19 }
 0x114   :  { %v689_v28 = vpop.f32.mrb[7].mxu0  ;;  %v713_v29 = vpop.f32.mrb[7].mxu1  ;;  %599 = vst [vmem:[#allocation6 + $0x8] sm:$0xff] %v583_v26  ;;  %607 = vst [vmem:[#allocation6 + $0x48] sm:$0xff] %v591_v27 }
 0x115   :  { %v536_v30 = vmul.f32 %v687_v22, %v467_v50  ;;  %v544_v31 = vmul.f32 %v711_v23, %v507_v11  ;;  %v690_v32 = vadd.f32 %v689_v28, %v688_v24  ;;  %v714_v33 = vadd.f32 %v713_v29, %v712_v25  ;;  %v532_v24 = vpop.permute.xlu1 %531 }
 0x117   :  { %vm552_vm4 = vcmp.gt.f32.partialorder %v536_v30, 0.0  ;;  %v568_v35 = vmul.f32 0.0, %v536_v30  ;;  %vm560_vm5 = vcmp.gt.f32.partialorder %v544_v31, 0.0  ;;  %v576_v36 = vmul.f32 0.0, %v544_v31 }
 0x118   :  { %v537_v38 = vmul.f32 %v690_v32, %v472_v52  ;;  %v545_v39 = vmul.f32 %v714_v33, %v512_v34  ;;  %v691_v42 = vpop.f32.mrb[8].mxu0  ;;  %v715_v43 = vpop.f32.mrb[8].mxu1 }
 0x119   :  { %v584_v40 = vsel %vm552_vm4, %v536_v30, %v568_v35  ;;  %v592_v41 = vsel %vm560_vm5, %v544_v31, %v576_v36  ;;  %v692_v46 = vpop.f32.mrb[9].mxu0  ;;  %v716_v47 = vpop.f32.mrb[9].mxu1 }
 0x11a   :  { %600 = vst [vmem:[#allocation6 + $0x10] sm:$0xff] %v584_v40  ;;  %608 = vst [vmem:[#allocation6 + $0x50] sm:$0xff] %v592_v41  ;;  %vm553_vm6 = vcmp.gt.f32.partialorder %v537_v38, 0.0  ;;  %v569_v44 = vmul.f32 0.0, %v537_v38  ;;  %vm561_vm7 = vcmp.gt.f32.partialorder %v545_v39, 0.0  ;;  %v577_v45 = vmul.f32 0.0, %v545_v39 }
 0x11b   :  { %v693_v48 = vadd.f32 %v692_v46, %v691_v42  ;;  %v717_v49 = vadd.f32 %v716_v47, %v715_v43  ;;  %v694_v50 = vpop.f32.mrb[10].mxu0  ;;  %v718_v51 = vpop.f32.mrb[10].mxu1 }
 0x11c   :  { %v585_v57 = vsel %vm553_vm6, %v537_v38, %v569_v44  ;;  %v593_v58 = vsel %vm561_vm7, %v545_v39, %v577_v45  ;;  %v695_v52 = vpop.f32.mrb[11].mxu0  ;;  %v719_v59 = vpop.f32.mrb[11].mxu1 }
 0x11d   :  { %601 = vst [vmem:[#allocation6 + $0x18] sm:$0xff] %v585_v57  ;;  %609 = vst [vmem:[#allocation6 + $0x58] sm:$0xff] %v593_v58  ;;  %v538_v60 = vmul.f32 %v693_v48, %v975_v53  ;;  %v546_v61 = vmul.f32 %v717_v49, %v517_v37  ;;  %v696_v62 = vadd.f32 %v695_v52, %v694_v50 }
 0x11e   :  { %v720_v63 = vadd.f32 %v719_v59, %v718_v51 }
 0x11f   :  { %vm554_vm8 = vcmp.gt.f32.partialorder %v538_v60, 0.0  ;;  %v570_v1 = vmul.f32 0.0, %v538_v60  ;;  %vm562_vm9 = vcmp.gt.f32.partialorder %v546_v61, 0.0  ;;  %v578_v2 = vmul.f32 0.0, %v546_v61 }
 0x120   :  { %v539_v4 = vmul.f32 %v696_v62, %v977_v54  ;;  %v547_v5 = vmul.f32 %v720_v63, %v522_v0  ;;  %v697_v8 = vpop.f32.mrb[12].mxu0  ;;  %v721_v9 = vpop.f32.mrb[12].mxu1 }
 0x121   :  { %v586_v6 = vsel %vm554_vm8, %v538_v60, %v570_v1  ;;  %v594_v7 = vsel %vm562_vm9, %v546_v61, %v578_v2  ;;  %v698_v11 = vpop.f32.mrb[13].mxu0  ;;  %v722_v12 = vpop.f32.mrb[13].mxu1 }
 0x122   :  { %602 = vst [vmem:[#allocation6 + $0x20] sm:$0xff] %v586_v6  ;;  %610 = vst [vmem:[#allocation6 + $0x60] sm:$0xff] %v594_v7  ;;  %vm555_vm10 = vcmp.gt.f32.partialorder %v539_v4, 0.0  ;;  %v571_v53 = vmul.f32 0.0, %v539_v4  ;;  %vm563_vm11 = vcmp.gt.f32.partialorder %v547_v5, 0.0  ;;  %v579_v10 = vmul.f32 0.0, %v547_v5 }
 0x123   :  { %v699_v13 = vadd.f32 %v698_v11, %v697_v8  ;;  %v723_v14 = vadd.f32 %v722_v12, %v721_v9  ;;  %v700_v15 = vpop.f32.mrb[14].mxu0  ;;  %v724_v16 = vpop.f32.mrb[14].mxu1 }
 0x124   :  { %v587_v17 = vsel %vm555_vm10, %v539_v4, %v571_v53  ;;  %v595_v18 = vsel %vm563_vm11, %v547_v5, %v579_v10  ;;  %v701_v54 = vpop.f32.mrb[15].mxu0  ;;  %v725_v19 = vpop.f32.mrb[15].mxu1 }
 0x125   :  { %603 = vst [vmem:[#allocation6 + $0x28] sm:$0xff] %v587_v17  ;;  %611 = vst [vmem:[#allocation6 + $0x68] sm:$0xff] %v595_v18  ;;  %v540_v20 = vmul.f32 %v699_v13, %v979_v55  ;;  %v548_v21 = vmul.f32 %v723_v14, %v527_v3  ;;  %v702_v22 = vadd.f32 %v701_v54, %v700_v15 }
 0x126   :  { %v726_v23 = vadd.f32 %v725_v19, %v724_v16 }
 0x127   :  { %vm556_vm12 = vcmp.gt.f32.partialorder %v540_v20, 0.0  ;;  %v572_v25 = vmul.f32 0.0, %v540_v20  ;;  %vm564_vm13 = vcmp.gt.f32.partialorder %v548_v21, 0.0  ;;  %v580_v26 = vmul.f32 0.0, %v548_v21 }
 0x128   :  { %v541_v27 = vmul.f32 %v702_v22, %v981_v56  ;;  %v549_v28 = vmul.f32 %v726_v23, %v532_v24 }
 0x129   :  { %v588_v29 = vsel %vm556_vm12, %v540_v20, %v572_v25  ;;  %v596_v30 = vsel %vm564_vm13, %v548_v21, %v580_v26 }
 0x12a   :  { %604 = vst [vmem:[#allocation6 + $0x30] sm:$0xff] %v588_v29  ;;  %612 = vst [vmem:[#allocation6 + $0x70] sm:$0xff] %v596_v30  ;;  %vm557_vm14 = vcmp.gt.f32.partialorder %v541_v27, 0.0  ;;  %v573_v31 = vmul.f32 0.0, %v541_v27  ;;  %vm565_vm15 = vcmp.gt.f32.partialorder %v549_v28, 0.0  ;;  %v581_v55 = vmul.f32 0.0, %v549_v28 }
 0x12c   :  { %v589_v32 = vsel %vm557_vm14, %v541_v27, %v573_v31  ;;  %v597_v33 = vsel %vm565_vm15, %v549_v28, %v581_v55 }
 0x12d   :  { %605 = vst [vmem:[#allocation6 + $0x38] sm:$0xff] %v589_v32  ;;  %613 = vst [vmem:[#allocation6 + $0x78] sm:$0xff] %v597_v33 }
 0x12e   :  { %825 = shalt.err (!%p822_p12)
}
 0x12f   :  { %s826_s9 = scalar_lea.hbm %s1002_s3, 2048 }
 0x130   :  { %p827_p13 = scmp.ne.s32.totalorder %s1002_s3, %s826_s9  ;;  %p830_p0 = scmp.lt.u32.totalorder %s826_s9, %s1002_s3 }
 0x132   :  { %p832_p1 = pnand %p830_p0, %p827_p13 }
 0x134   :  { %835 = shalt.err (!%p832_p1)
}
 0x135   :  { %s845_s14 = smov 128   ;;  %s846_s15 = smov 8  }
 0x136   :  { %625 = dma.vmem_to_hbm [thread:$0]  %s620_s2, 2048, %s1002_s3, [#allocation5], %s845_s14, %s845_s14, %s846_s15  }
 0x137   :  { %838 = dma.done.wait [#allocation5], 2048  }
 0x138   :  { %839 = vsyncadd [#allocation5], 4294965248 }
 0x139   :  { %629 = vsyncpa [#allocation4], 1 }
 0x13a   :  { %630 = vsyncpa [#allocation5], 1 }

</bundles_post_ra>
